<compile_context>
chip_gen: v7x
topology: tpu7x:2x2x1
jax: 0.10.0
libtpu: 0.0.40
codegen_flags: <defaults>
</compile_context>

<pallas_src>
import functools

import jax
import jax.numpy as jnp
from jax.experimental import pallas as pl
from jax.experimental.pallas import tpu as pltpu

_IN = 512          # flattened input features (C*H*W)
_OUT = 2           # real output width of dense_4
_OUT_PAD = 128     # dense_4 padded to a full lane width (zero-padded columns)
_B_SUB = 16        # bf16 vreg packs (16, 128) -> pad batch rows to 16
_MAX_TILE_B = 1024  # batch tile (per grid step); ~2 MiB double-buffered input


def _round_up(n, m):
    return ((n + m - 1) // m) * m


def _mlp_kernel(x_ref, w_ref, b_ref, o_ref):
    """Collapsed 4-layer MLP: one matmul + bias + sigmoid, all in VMEM."""
    x = x_ref[...]                                            # (TILE_B, 512) bf16
    w = w_ref[...]                                            # (512, 128)    bf16
    b = b_ref[...]                                            # (1, 128)      f32
    logits = jnp.dot(x, w, preferred_element_type=jnp.float32) + b
    # sigmoid(z) = 1 / (1 + exp(-z)); exp + approx reciprocal both go to the
    # EUP slot, keeping the VALU free for the bias add at large tiles.
    o_ref[...] = pl.reciprocal(1.0 + jnp.exp(-logits), approx=True)


def pack_params(params):
    """One-time packing: collapse the activation-free Linear chain in f32.

    Returns (w_eff, b_eff) with w_eff (512,128) bf16 (columns 2..127 zero) and
    b_eff (1,128) f32 (columns 2..127 zero).
    """
    (w1, b1), (w2, b2), (w3, b3), (w4, b4) = params
    w_eff = w1 @ w2 @ w3 @ w4                                  # (512, 2) f32
    b_eff = ((b1 @ w2 + b2) @ w3 + b3) @ w4 + b4               # (1, 2)   f32
    w_pad = (jnp.zeros((_IN, _OUT_PAD), jnp.float32)
             .at[:, :_OUT].set(w_eff).astype(jnp.bfloat16))
    b_pad = jnp.zeros((1, _OUT_PAD), jnp.float32).at[:, :_OUT].set(b_eff)
    return w_pad, b_pad


@jax.jit
def classification_model_forward(x, packed_params):
    """x: (B, C, H, W) float32 with C*H*W == 512. Returns (B, 2) float32."""
    w_eff, b_eff = packed_params
    B = x.shape[0]
    x_flat = x.reshape(B, -1)                                  # nn.Flatten()
    assert x_flat.shape[1] == _IN, x_flat.shape
    x_flat = x_flat.astype(jnp.bfloat16)

    # Batch tiling: pad rows once to a multiple of the tile (itself a multiple
    # of 16 so bf16 tiles are full vregs), then run a 1-D "parallel" grid.
    tile_b = min(_MAX_TILE_B, _round_up(B, _B_SUB))
    b_pad = _round_up(B, tile_b)
    if b_pad != B:
        x_flat = jnp.pad(x_flat, ((0, b_pad - B), (0, 0)))

    grid = (b_pad // tile_b,)
    out_pad = pl.pallas_call(
        _mlp_kernel,
        out_shape=jax.ShapeDtypeStruct((b_pad, _OUT_PAD), jnp.float32),
        grid=grid,
        in_specs=[
            pl.BlockSpec((tile_b, _IN), lambda i: (i, 0)),      # activations
            pl.BlockSpec((_IN, _OUT_PAD), lambda i: (0, 0)),    # weights (resident)
            pl.BlockSpec((1, _OUT_PAD), lambda i: (0, 0)),      # bias (resident)
        ],
        out_specs=pl.BlockSpec((tile_b, _OUT_PAD), lambda i: (i, 0)),
        compiler_params=pltpu.CompilerParams(
            dimension_semantics=("parallel",)),
    )(x_flat, w_eff, b_eff)

    return out_pad[:B, :_OUT]


def init_params(key):
    """Deterministic init matching nn.Linear shapes.

    PyTorch stores weight as (out, in); we store the transpose (in, out) so
    x @ W works directly. Biases are stored as (1, out).
    """
    dims = [(512, 128), (128, 512), (512, 128), (128, 2)]
    params = []
    for i, (fan_in, fan_out) in enumerate(dims):
        kw, kb, key = jax.random.split(jax.random.fold_in(key, i), 3)
        bound = 1.0 / jnp.sqrt(fan_in)
        w = jax.random.uniform(kw, (fan_in, fan_out), jnp.float32, -bound, bound)
        b = jax.random.uniform(kb, (1, fan_out), jnp.float32, -bound, bound)
        params.append((w, b))
    return params


def reference_forward_collapsed(x, params):
    """Pure-JAX reference with the same math as the kernel (exact sigmoid)."""
    (w1, b1), (w2, b2), (w3, b3), (w4, b4) = params
    w_eff = (w1 @ w2 @ w3 @ w4).astype(jnp.bfloat16)
    b_eff = ((b1 @ w2 + b2) @ w3 + b3) @ w4 + b4
    h = x.reshape(x.shape[0], -1).astype(jnp.bfloat16)
    logits = jnp.dot(h, w_eff, preferred_element_type=jnp.float32) + b_eff
    return jax.nn.sigmoid(logits)


def reference_forward_f32(x, params):
    """Full-precision per-layer reference matching the original PyTorch module."""
    h = x.reshape(x.shape[0], -1)
    for (w, b) in params:
        h = h @ w + b
    return jax.nn.sigmoid(h)


if __name__ == "__main__":
    key = jax.random.PRNGKey(0)
    pkey, xkey = jax.random.split(key)

    params = init_params(pkey)
    packed = pack_params(params)

    # (B, C, H, W) with C*H*W = 4*8*16 = 512, matching Linear(512, ...)
    x = jax.random.normal(xkey, (2, 4, 8, 16), dtype=jnp.float32)

    out = jax.block_until_ready(classification_model_forward(x, packed))
    assert out.shape == (2, 2), out.shape

    ref_collapsed = reference_forward_collapsed(x, params)
    ref_f32 = reference_forward_f32(x, params)
    assert jnp.allclose(out, ref_collapsed, atol=1e-3, rtol=1e-3), (out, ref_collapsed)
    assert jnp.allclose(out, ref_f32, atol=3e-2, rtol=3e-2), (out, ref_f32)

    print("KERNEL_OK")
</pallas_src>

<mosaic_0001>
module attributes {stable_mosaic.version = 11 : i64} {
  func.func @_mlp_kernel(%arg0: i32, %arg1: memref<16x512xbf16, #tpu.memory_space<vmem>>, %arg2: memref<512x128xbf16, #tpu.memory_space<vmem>>, %arg3: memref<1x128xf32, #tpu.memory_space<vmem>>, %arg4: memref<16x128xf32, #tpu.memory_space<vmem>>) attributes {dimension_semantics = [#tpu.dimension_semantics<parallel>], iteration_bounds = array<i64: 1>, scalar_prefetch = 0 : i64, scratch_operands = 0 : i64, tpu.core_type = #tpu.core_type<tc>, window_params = [{transform_indices = @transform_0, window_bounds = array<i64: 16, 512>}, {pipeline_mode = #tpu.pipeline_mode<synchronous>, transform_indices = @transform_1, window_bounds = array<i64: 512, 128>}, {pipeline_mode = #tpu.pipeline_mode<synchronous>, transform_indices = @transform_2, window_bounds = array<i64: 1, 128>}, {transform_indices = @transform_3, window_bounds = array<i64: 16, 128>}]} {
    %c0 = arith.constant 0 : index
    %c0_0 = arith.constant 0 : index
    %0 = vector.load %arg1[%c0, %c0_0] : memref<16x512xbf16, #tpu.memory_space<vmem>>, vector<16x512xbf16>
    %c0_1 = arith.constant 0 : index
    %c0_2 = arith.constant 0 : index
    %1 = vector.load %arg2[%c0_1, %c0_2] : memref<512x128xbf16, #tpu.memory_space<vmem>>, vector<512x128xbf16>
    %c0_3 = arith.constant 0 : index
    %c0_4 = arith.constant 0 : index
    %2 = vector.load %arg3[%c0_3, %c0_4] : memref<1x128xf32, #tpu.memory_space<vmem>>, vector<1x128xf32>
    %cst = arith.constant dense<0.000000e+00> : vector<16x128xf32>
    %3 = tpu.matmul %0, %1, %cst {dimension_numbers = #tpu.dot_dimension_numbers<[1], [0], [0], [1], [0, 0, 1, 1], [], []>} : vector<16x512xbf16>, vector<512x128xbf16>, vector<16x128xf32> -> vector<16x128xf32>
    %4 = vector.broadcast %2 : vector<1x128xf32> to vector<16x128xf32>
    %5 = arith.addf %3, %4 : vector<16x128xf32>
    %cst_5 = arith.constant 0.000000e+00 : f32
    %6 = vector.broadcast %cst_5 : f32 to vector<16x128xf32>
    %7 = arith.subf %6, %5 : vector<16x128xf32>
    %8 = math.exp %7 : vector<16x128xf32>
    %cst_6 = arith.constant 1.000000e+00 : f32
    %9 = vector.broadcast %cst_6 : f32 to vector<16x128xf32>
    %10 = arith.addf %9, %8 : vector<16x128xf32>
    %11 = tpu.reciprocal %10 {approx = true} : vector<16x128xf32> -> vector<16x128xf32>
    %c0_7 = arith.constant 0 : index
    %c0_8 = arith.constant 0 : index
    %12 = vector.load %arg4[%c0_7, %c0_8] : memref<16x128xf32, #tpu.memory_space<vmem>>, vector<16x128xf32>
    tpu.vector_store %arg4[%c0_7, %c0_8], %11 {strides = array<i32>} : memref<16x128xf32, #tpu.memory_space<vmem>>, vector<16x128xf32>,
    return
  }
  func.func @transform_0(%arg0: i32) -> (i32, i32) {
    %c0_i32 = arith.constant 0 : i32
    %c0_i32_0 = arith.constant 0 : i32
    return %arg0, %c0_i32 : i32, i32
  }
  func.func @transform_1(%arg0: i32) -> (i32, i32) {
    %c0_i32 = arith.constant 0 : i32
    %c0_i32_0 = arith.constant 0 : i32
    %c0_i32_1 = arith.constant 0 : i32
    return %c0_i32, %c0_i32_0 : i32, i32
  }
  func.func @transform_2(%arg0: i32) -> (i32, i32) {
    %c0_i32 = arith.constant 0 : i32
    %c0_i32_0 = arith.constant 0 : i32
    %c0_i32_1 = arith.constant 0 : i32
    return %c0_i32, %c0_i32_0 : i32, i32
  }
  func.func @transform_3(%arg0: i32) -> (i32, i32) {
    %c0_i32 = arith.constant 0 : i32
    %c0_i32_0 = arith.constant 0 : i32
    return %arg0, %c0_i32 : i32, i32
  }
}

</mosaic_0001>

<bundles_post_ra>
// kernel: classification_model_forward.1
= control target key start
LH: loop header
LB: loop body
LE: loop exit
PB: predicated region body
PF: predicated region fallthrough
CT: control target
= control target key end

     0   :  { %8 = vsyncpa [#allocation3], 0  ;;  %s569_s12 = smov [#allocation2]   ;;  %s625_s0 = inlined_call_operand.vmem [shape: bf16[16,512], index: 0, kind: input, shape index: {}]   ;;  %s626_s1 = inlined_call_operand.hbm [shape: bf16[512,128], index: 1, kind: input, shape index: {}]   ;;  %s627_s2 = inlined_call_operand.vmem [shape: f32[1,128], index: 2, kind: input, shape index: {}]   ;;  %s628_s3 = inlined_call_operand.vmem [shape: f32[16,128], index: 3, kind: output, shape index: {}]  }
   0x1   :  { %s16_s13 = sshll.u32 %s569_s12, 4  ;;  %s545_s16 = scalar_lea.hbm %s626_s1, 4096  ;;  %s17_s13 = int_to_ptr.vmem [resolvable:$true] %s16_s13 }
   0x2   :  { %p546_p0 = scmp.ne.s32.totalorder %s626_s1, %s545_s16  ;;  %p549_p1 = scmp.lt.u32.totalorder %s545_s16, %s626_s1 }
   0x4   :  { %p551_p2 = pnand %p549_p1, %p546_p0 }
   0x6   :  { %554 = shalt.err (!%p551_p2)
}
   0x7   :  { %s555_s21 = scalar_lea.vmem %s17_s13, 4096  ;;  %p560_p4 = scmp.lt.s32.totalorder %s17_s13, %s17_s13 }
   0x8   :  { %p556_p3 = scmp.ne.s32.totalorder %s17_s13, %s555_s21  ;;  %p561_p5 = scmp.lt.s32.totalorder %s555_s21, %s555_s21 }
   0xa   :  { %p562_p6 = por %p561_p5, %p560_p4 }
   0xc   :  { %p563_p7 = pnand %p562_p6, %p556_p3 }
   0xe   :  { %566 = shalt.err (!%p563_p7)
}
   0xf   :  { %s570_s22 = smov 64   ;;  %s571_s23 = smov 4  }
  0x10   :  { %22 = dma.hbm_to_vmem [thread:$0]  %s626_s1, 4096, %s17_s13, [#allocation3], %s570_s22, %s570_s22, %s571_s23  }
  0x11   :  { %567 = dma.done.wait [#allocation3], 4096  }
  0x12   :  { %568 = vsyncadd [#allocation3], 4294963200  ;;  %v499_v0 = vld [vmem:[#allocation2 + $0x40] sm:$0xff]   ;;  %v503_v4 = vld [vmem:[#allocation2 + $0x48] sm:$0xff]  }
  0x13   :  { %v500_v1 = vld [vmem:[#allocation2 + $0xc0] sm:$0xff]   ;;  %452 = vmatprep.subr.bf16.mxu0 %v499_v0  ;;  %v504_v5 = vld [vmem:[#allocation2 + $0xc8] sm:$0xff]   ;;  %v507_v8 = vld [vmem:[#allocation2 + $0x50] sm:$0xff]  }
  0x14   :  { %v501_v2 = vld [vmem:[#allocation2] sm:$0xff]   ;;  %474 = vmatprep.subr.bf16.mxu1 %v500_v1  ;;  %v505_v6 = vld [vmem:[#allocation2 + $0x8] sm:$0xff]   ;;  %v508_v9 = vld [vmem:[#allocation2 + $0xd0] sm:$0xff]  }
  0x15   :  { %v502_v3 = vld [vmem:[#allocation2 + $0x80] sm:$0xff]   ;;  %453 = vmatpush3.bf16.msra.mxu0 %v501_v2  ;;  %v506_v7 = vld [vmem:[#allocation2 + $0x88] sm:$0xff]   ;;  %v509_v10 = vld [vmem:[#allocation2 + $0x10] sm:$0xff]  }
  0x16   :  { %475 = vmatpush3.bf16.msra.mxu1 %v502_v3  ;;  %454 = vmatprep.subr.bf16.mxu0 %v503_v4  ;;  %v510_v11 = vld [vmem:[#allocation2 + $0x90] sm:$0xff]   ;;  %v511_v12 = vld [vmem:[#allocation2 + $0x58] sm:$0xff]   ;;  %v515_v16 = vld [vmem:[#allocation2 + $0x60] sm:$0xff]  }
  0x17   :  { %476 = vmatprep.subr.bf16.mxu1 %v504_v5  ;;  %v512_v13 = vld [vmem:[#allocation2 + $0xd8] sm:$0xff]   ;;  %v516_v17 = vld [vmem:[#allocation2 + $0xe0] sm:$0xff]   ;;  %v519_v20 = vld [vmem:[#allocation2 + $0x68] sm:$0xff]  }
  0x18   :  { %v513_v14 = vld [vmem:[#allocation2 + $0x18] sm:$0xff]   ;;  %v517_v18 = vld [vmem:[#allocation2 + $0x20] sm:$0xff]   ;;  %v520_v21 = vld [vmem:[#allocation2 + $0xe8] sm:$0xff]  }
  0x19   :  { %455 = vmatpush3.bf16.msra.mxu0 %v505_v6  ;;  %v514_v15 = vld [vmem:[#allocation2 + $0x98] sm:$0xff]   ;;  %v518_v19 = vld [vmem:[#allocation2 + $0xa0] sm:$0xff]   ;;  %v521_v22 = vld [vmem:[#allocation2 + $0x28] sm:$0xff]  }
  0x1a   :  { %477 = vmatpush3.bf16.msra.mxu1 %v506_v7  ;;  %456 = vmatprep.subr.bf16.mxu0 %v507_v8  ;;  %v522_v23 = vld [vmem:[#allocation2 + $0xa8] sm:$0xff]   ;;  %v523_v24 = vld [vmem:[#allocation2 + $0x70] sm:$0xff]   ;;  %v527_v28 = vld [vmem:[#allocation2 + $0x78] sm:$0xff]  }
  0x1b   :  { %478 = vmatprep.subr.bf16.mxu1 %v508_v9  ;;  %v524_v25 = vld [vmem:[#allocation2 + $0xf0] sm:$0xff]   ;;  %v528_v29 = vld [vmem:[#allocation2 + $0xf8] sm:$0xff]   ;;  %v415_v38 = vld [vmem:[%s627_s2] ss:$0 sm:$0xff] }
  0x1c   :  { %v525_v26 = vld [vmem:[#allocation2 + $0x30] sm:$0xff]   ;;  %v529_v30 = vld [vmem:[#allocation2 + $0x38] sm:$0xff]  }
  0x1d   :  { %457 = vmatpush3.bf16.msra.mxu0 %v509_v10  ;;  %v526_v27 = vld [vmem:[#allocation2 + $0xb0] sm:$0xff]   ;;  %v530_v31 = vld [vmem:[#allocation2 + $0xb8] sm:$0xff]  }
  0x1e   :  { %479 = vmatpush3.bf16.msra.mxu1 %v510_v11  ;;  %458 = vmatprep.subr.bf16.mxu0 %v511_v12  ;;  %v531_v32 = vld [vmem:[%s625_s0] ss:$16 sps:$4 sm:$0xff]   ;;  %v533_v33 = vld [vmem:[%s625_s0 + $0x4] ss:$16 sps:$4 sm:$0xff]   ;;  %v534_v34 = vld [vmem:[%s625_s0 + $0x8] ss:$16 sps:$4 sm:$0xff]  }
  0x1f   :  { %480 = vmatprep.subr.bf16.mxu1 %v512_v13  ;;  %v536_v35 = vld [vmem:[%s625_s0 + $0xc] ss:$16 sps:$4 sm:$0xff]   ;;  %348 = vmatprep.mubr.bf16.mxu0 %v533_v33 }
  0x20   :  { %389 = vmatprep.mubr.bf16.mxu1 %v536_v35 }
  0x21   :  { %459 = vmatpush3.bf16.msra.mxu0 %v513_v14 }
  0x22   :  { %481 = vmatpush3.bf16.msra.mxu1 %v514_v15  ;;  %460 = vmatprep.subr.bf16.mxu0 %v515_v16 }
  0x23   :  { %482 = vmatprep.subr.bf16.mxu1 %v516_v17 }
  0x25   :  { %461 = vmatpush3.bf16.msra.mxu0 %v517_v18 }
  0x26   :  { %483 = vmatpush3.bf16.msra.mxu1 %v518_v19  ;;  %462 = vmatprep.subr.bf16.mxu0 %v519_v20 }
  0x27   :  { %484 = vmatprep.subr.bf16.mxu1 %v520_v21 }
  0x29   :  { %463 = vmatpush3.bf16.msra.mxu0 %v521_v22 }
  0x2a   :  { %485 = vmatpush3.bf16.msra.mxu1 %v522_v23  ;;  %464 = vmatprep.subr.bf16.mxu0 %v523_v24 }
  0x2b   :  { %486 = vmatprep.subr.bf16.mxu1 %v524_v25 }
  0x2d   :  { %465 = vmatpush3.bf16.msra.mxu0 %v525_v26 }
  0x2e   :  { %487 = vmatpush3.bf16.msra.mxu1 %v526_v27  ;;  %466 = vmatprep.subr.bf16.mxu0 %v527_v28 }
  0x2f   :  { %488 = vmatprep.subr.bf16.mxu1 %v528_v29 }
  0x31   :  { %467 = vmatpush3.bf16.msra.mxu0 %v529_v30 }
  0x32   :  { %489 = vmatpush3.bf16.msra.mxu1 %v530_v31 }
  0x34   :  { %349 = vmatmul.mubr.bf16.vlgmr.msra.gmra.mrb[0].mxu0 %v531_v32 }
  0x35   :  { %390 = vmatmul.mubr.bf16.vlgmr.msra.gmra.mrb[0].mxu1 %v534_v34 }
 0x107   :  { %v468_v36 = vpop.f32.mrb[0].mxu0 }
 0x108   :  { %v490_v37 = vpop.f32.mrb[0].mxu1  ;;  %v469_v39 = vpop.f32.mrb[1].mxu0 }
 0x109   :  { %v470_v40 = vadd.f32 %v469_v39, %v468_v36  ;;  %v491_v41 = vpop.f32.mrb[1].mxu1  ;;  %v471_v42 = vpop.f32.mrb[2].mxu0 }
 0x10a   :  { %v492_v43 = vadd.f32 %v491_v41, %v490_v37  ;;  %v493_v44 = vpop.f32.mrb[2].mxu1  ;;  %v472_v45 = vpop.f32.mrb[3].mxu0 }
 0x10b   :  { %v351_v46 = vadd.f32 %v470_v40, %v415_v38  ;;  %v473_v47 = vadd.f32 %v472_v45, %v471_v42  ;;  %v494_v48 = vpop.f32.mrb[3].mxu1 }
 0x10c   :  { %v495_v49 = vadd.f32 %v494_v48, %v493_v44 }
 0x10d   :  { %v392_v50 = vadd.f32 %v492_v43, %v351_v46  ;;  %v354_v51 = vadd.f32 %v473_v47, %v415_v38 }
 0x10f   :  { %v398_v52 = vsub.f32 0.0, %v392_v50  ;;  %v395_v53 = vadd.f32 %v495_v49, %v354_v51 }
 0x111   :  { %v400_v54 = vmul.f32 1.442695, %v398_v52  ;;  %v399_v55 = vsub.f32 0.0, %v395_v53 }
 0x113   :  { %537 = vpow2.f32 %v400_v54  ;;  %v402_v56 = vmul.f32 1.442695, %v399_v55 }
 0x115   :  { %539 = vpow2.f32 %v402_v56 }
 0x11d   :  { %v538_v57 = vpop.eup %537 }
 0x11e   :  { %v404_v58 = vadd.f32 1.0, %v538_v57 }
 0x11f   :  { %v540_v59 = vpop.eup %539 }
 0x120   :  { %541 = vrcp.f32 %v404_v58  ;;  %v405_v60 = vadd.f32 1.0, %v540_v59 }
 0x122   :  { %543 = vrcp.f32 %v405_v60 }
 0x12a   :  { %v542_v61 = vpop.eup %541 }
 0x12b   :  { %408 = vst [vmem:[%s628_s3] sm:$0xff] %v542_v61 }
 0x12c   :  { %v544_v62 = vpop.eup %543 }
 0x12d   :  { %409 = vst [vmem:[%s628_s3 + $0x8] sm:$0xff] %v544_v62 }
 0x12e   :  { %414 = vsyncpa [#allocation3], 1 }

</bundles_post_ra>
